<compile_context>
chip_gen: v6e
topology: v6e:2x2x1
jax: 0.10.0
libtpu: 0.0.40
codegen_flags: <defaults>
</compile_context>

<pallas_src>
import functools

import jax
import jax.numpy as jnp
from jax.experimental import pallas as pl
from jax.experimental.pallas import tpu as pltpu


NUM_CORES = 2  # v7x has 2 TensorCores/chip; harmless (serialized) on v5e/v6e.


def _anchor_loss_kernel(logits_ref, targets_ref, out_ref, acc_ref,
                        *, gamma, delta, batch):
    core = pl.program_id(0)
    i = pl.program_id(1)
    n_i = pl.num_programs(1)

    @pl.when(i == 0)
    def _():
        acc_ref[...] = jnp.zeros_like(acc_ref)

    logits = logits_ref[...]                         # [TB, C] native dtype
    tgt = targets_ref[...]                           # [TB, 1] int32
    tb, c = logits.shape

    # Row max in native dtype (exact: pure element selection); widen to f32
    # only inside the fused subtract + exp so no full f32 copy persists.
    m = jnp.max(logits, axis=1, keepdims=True).astype(jnp.float32)    # [TB,1]
    shifted = logits.astype(jnp.float32) - m                          # [TB,C]
    e = jnp.exp(shifted)                                              # [TB,C]

    # Target-class select mask from a 2-D class-id iota (no float one-hot).
    class_ids = jax.lax.broadcasted_iota(jnp.int32, (tb, c), 1)
    is_target = class_ids == tgt                                      # [TB,C]

    sumexp = jnp.sum(e, axis=1, keepdims=True)                        # [TB,1]
    shift_t = jnp.sum(jnp.where(is_target, shifted, 0.0),
                      axis=1, keepdims=True)                          # logit_t - m
    ce = jnp.log(sumexp) - shift_t                                    # [TB,1] CE

    if delta == 0.0 and gamma != 0.0:
        # anchor == p_t  =>  |p_t - anchor| ** gamma == 0  =>  modulator == 1
        loss = ce
    else:
        p_t = jnp.exp(shift_t) / sumexp              # softmax prob of target
        if delta >= 0.0:
            # clip(p_t - delta, 0, 1) then |p_t - anchor| == min(p_t, delta)
            diff_t = jnp.minimum(p_t, jnp.float32(delta))
        else:
            anchor = jnp.clip(p_t - delta, 0.0, 1.0)
            diff_t = jnp.abs(p_t - anchor)
        # |x| ** gamma via EUP exp/log with exact behavior at x == 0
        # (0 ** gamma == 0 for gamma > 0, == 1 for gamma == 0, as in torch).
        zero_pow = 1.0 if gamma == 0.0 else 0.0
        pow_t = jnp.where(
            diff_t > 0.0,
            jnp.exp(gamma * jnp.log(jnp.maximum(diff_t, 1e-38))),
            zero_pow,
        )
        loss = ce * (1.0 + pow_t)

    # Global row offset of this block (n_i * tb rows per core value).
    block_start = (core * n_i + i) * tb

    @pl.when(block_start + tb <= batch)              # hot path: all rows valid
    def _():
        acc_ref[...] += jnp.reshape(jnp.sum(loss), (1, 1))

    @pl.when(block_start + tb > batch)               # tail / duplicated block
    def _():
        row_ids = block_start + jax.lax.broadcasted_iota(jnp.int32, (tb, 1), 0)
        masked = jnp.where(row_ids < batch, loss, 0.0)
        acc_ref[...] += jnp.reshape(jnp.sum(masked), (1, 1))

    @pl.when(i == n_i - 1)
    def _():
        out_ref[...] = acc_ref[...].reshape(1, 1, 1)


def _choose_tile_b(batch, num_classes, bytes_per_elem, num_cores):
    """Pick the batch-tile size.

    Budget is based on the *f32 working set*: double-buffered native-dtype
    input plus ~3 [TB, C] 32-bit intermediates (shifted logits, exp values,
    class-id iota), kept well under the 48 MiB VMEM limit we request so the
    same choice is safe on v7x's 64 MiB VMEM as well as v5e/v6e's 128 MiB.
    """
    budget = 36 * 1024 * 1024
    per_row = num_classes * (2 * bytes_per_elem + 12)
    tile = budget // max(1, per_row)
    tile = max(8, min(int(tile), 8192))              # cap raised per review
    tile -= tile % 8
    # Don't exceed one core's share of the batch so both v7x TensorCores get
    # work whenever the batch allows it.
    per_core = -(-batch // num_cores)
    per_core = ((per_core + 7) // 8) * 8
    return max(8, min(tile, per_core))


def anchor_loss(logits, targets, gamma=0.8, delta=0.0):
    """Pallas TPU implementation of AnchorLoss.forward.

    logits:  [B, C] float (any float dtype; f32 math inside the kernel —
             feeding bf16 halves HBM traffic, which is the win on v5e)
    targets: [B]    integer class ids
    returns: scalar f32 (mean anchor loss)
    """
    B, C = logits.shape
    targets_2d = targets.reshape(B, 1).astype(jnp.int32)
    bytes_per = jnp.dtype(logits.dtype).itemsize

    tile_b = _choose_tile_b(B, C, bytes_per, NUM_CORES)
    total_tiles = pl.cdiv(B, tile_b)
    tiles_per_core = pl.cdiv(total_tiles, NUM_CORES)
    grid = (NUM_CORES, tiles_per_core)

    def in_map(core, i):
        blk = core * tiles_per_core + i
        # Clamp so over-coverage grid points re-read a valid block; their rows
        # are masked out in-kernel (block_start >= B).
        return (jnp.minimum(blk, total_tiles - 1), 0)

    kernel = functools.partial(
        _anchor_loss_kernel, gamma=float(gamma), delta=float(delta), batch=B)

    partials = pl.pallas_call(
        kernel,
        out_shape=jax.ShapeDtypeStruct((NUM_CORES, 1, 1), jnp.float32),
        grid_spec=pltpu.PrefetchScalarGridSpec(
            num_scalar_prefetch=0,
            grid=grid,
            in_specs=[
                pl.BlockSpec((tile_b, C), in_map),       # logits tile
                pl.BlockSpec((tile_b, 1), in_map),       # targets tile
            ],
            out_specs=pl.BlockSpec((1, 1, 1), lambda core, i: (core, 0, 0)),
            scratch_shapes=[pltpu.VMEM((1, 1), jnp.float32)],
        ),
        compiler_params=pltpu.CompilerParams(
            dimension_semantics=("parallel", "arbitrary"),
            vmem_limit_bytes=48 * 1024 * 1024,
        ),
        cost_estimate=pl.CostEstimate(
            flops=5 * B * C,
            transcendentals=B * C + 4 * B,
            bytes_accessed=B * C * bytes_per + B * 4 + NUM_CORES * 4,
        ),
    )(logits, targets_2d)

    # Final per-core reduction and mean in plain JAX.
    return jnp.sum(partials) / jnp.float32(B)


def _anchor_loss_reference(logits, targets, gamma=0.8, delta=0.0):
    """Pure-JAX reference mirroring the PyTorch forward pass."""
    logits = logits.astype(jnp.float32)
    lse = jax.scipy.special.logsumexp(logits, axis=1)
    logit_t = jnp.take_along_axis(logits, targets[:, None], axis=1)[:, 0]
    ce = lse - logit_t
    probs = jax.nn.softmax(logits, axis=1)
    p_t = jnp.take_along_axis(probs, targets[:, None], axis=1)[:, 0]
    anchor = jnp.clip(p_t - delta, 0.0, 1.0)
    diff = probs - anchor[:, None]
    modulator = 1.0 + jnp.abs(diff) ** gamma
    mod_t = jnp.take_along_axis(modulator, targets[:, None], axis=1)[:, 0]
    return jnp.mean(ce * mod_t)


if __name__ == "__main__":
    key = jax.random.PRNGKey(0)
    k_logits, k_targets, k_logits2, k_targets2 = jax.random.split(key, 4)

    # Default config (gamma=0.8, delta=0.0), f32 logits, tiny batch.
    B, C = 8, 16
    logits_f32 = jax.random.normal(k_logits, (B, C), dtype=jnp.float32) * 2.0
    targets = jax.random.randint(k_targets, (B,), 0, C, dtype=jnp.int32)
    out = jax.block_until_ready(anchor_loss(logits_f32, targets))
    ref = _anchor_loss_reference(logits_f32, targets)
    assert jnp.allclose(out, ref, rtol=1e-5, atol=1e-5), (out, ref)

    # Non-trivial modulator (delta != 0) and bf16 logits (native-dtype path).
    logits_bf16 = logits_f32.astype(jnp.bfloat16)
    out2 = jax.block_until_ready(
        anchor_loss(logits_bf16, targets, gamma=0.8, delta=0.1))
    ref2 = _anchor_loss_reference(logits_bf16, targets, gamma=0.8, delta=0.1)
    assert jnp.allclose(out2, ref2, rtol=1e-5, atol=1e-5), (out2, ref2)

    # Multi-tile / two-core path with a ragged batch (exercises the masked
    # tail and the clamped over-coverage block).
    B3, C3 = 100, 16
    logits3 = jax.random.normal(k_logits2, (B3, C3), dtype=jnp.float32) * 2.0
    targets3 = jax.random.randint(k_targets2, (B3,), 0, C3, dtype=jnp.int32)
    out3 = jax.block_until_ready(anchor_loss(logits3, targets3))
    ref3 = _anchor_loss_reference(logits3, targets3)
    assert jnp.allclose(out3, ref3, rtol=1e-5, atol=1e-5), (out3, ref3)

    print("KERNEL_OK")
</pallas_src>

<mosaic_0001>
module attributes {stable_mosaic.version = 11 : i64} {
  func.func @_anchor_loss_kernel(%arg0: i32, %arg1: i32, %arg2: memref<8x16xf32, #tpu.memory_space<vmem>>, %arg3: memref<8x1xi32, #tpu.memory_space<vmem>>, %arg4: memref<1x1x1xf32, #tpu.memory_space<vmem>>, %arg5: memref<1x1xf32, #tpu.memory_space<vmem>>) attributes {dimension_semantics = [#tpu.dimension_semantics<parallel>, #tpu.dimension_semantics<arbitrary>], iteration_bounds = array<i64: 2, 1>, scalar_prefetch = 0 : i64, scratch_operands = 1 : i64, tpu.core_type = #tpu.core_type<tc>, window_params = [{transform_indices = @transform_0, window_bounds = array<i64: 8, 16>}, {transform_indices = @transform_1, window_bounds = array<i64: 8, 1>}, {transform_indices = @transform_2, window_bounds = array<i64: 1, 1, 1>}]} {
    %c0_i32 = arith.constant 0 : i32
    %0 = arith.cmpi eq, %arg1, %c0_i32 : i32
    %1 = arith.extui %0 : i1 to i32
    %c0_i32_0 = arith.constant 0 : i32
    %2 = arith.cmpi ne, %1, %c0_i32_0 : i32
    scf.if %2 {
      %cst_15 = arith.constant 0.000000e+00 : f32
      %35 = vector.broadcast %cst_15 : f32 to vector<1x1xf32>
      %c0_16 = arith.constant 0 : index
      %c0_17 = arith.constant 0 : index
      %36 = vector.load %arg5[%c0_16, %c0_17] : memref<1x1xf32, #tpu.memory_space<vmem>>, vector<1x1xf32>
      tpu.vector_store %arg5[%c0_16, %c0_17], %35 {strides = array<i32>} : memref<1x1xf32, #tpu.memory_space<vmem>>, vector<1x1xf32>,
    } else {
    }
    %c0 = arith.constant 0 : index
    %c0_1 = arith.constant 0 : index
    %3 = vector.load %arg2[%c0, %c0_1] : memref<8x16xf32, #tpu.memory_space<vmem>>, vector<8x16xf32>
    %c0_2 = arith.constant 0 : index
    %c0_3 = arith.constant 0 : index
    %4 = vector.load %arg3[%c0_2, %c0_3] : memref<8x1xi32, #tpu.memory_space<vmem>>, vector<8x1xi32>
    %cst = arith.constant dense<0xFF800000> : vector<8xf32>
    %5 = vector.multi_reduction <maximumf>, %3, %cst [1] : vector<8x16xf32> to vector<8xf32>
    %6 = vector.shape_cast %5 : vector<8xf32> to vector<8x1xf32>
    %7 = vector.broadcast %6 : vector<8x1xf32> to vector<8x16xf32>
    %8 = arith.subf %3, %7 : vector<8x16xf32>
    %9 = math.exp %8 : vector<8x16xf32>
    %10 = tpu.iota {dimensions = array<i32: 1>} : vector<8x16xi32>
    %11 = vector.broadcast %4 : vector<8x1xi32> to vector<8x16xi32>
    %12 = arith.cmpi eq, %10, %11 : vector<8x16xi32>
    %cst_4 = arith.constant dense<0.000000e+00> : vector<8xf32>
    %13 = vector.multi_reduction <add>, %9, %cst_4 [1] : vector<8x16xf32> to vector<8xf32>
    %14 = vector.shape_cast %13 : vector<8xf32> to vector<8x1xf32>
    %cst_5 = arith.constant 0.000000e+00 : f32
    %15 = vector.broadcast %cst_5 : f32 to vector<8x16xf32>
    %16 = arith.select %12, %8, %15 : vector<8x16xi1>, vector<8x16xf32>
    %cst_6 = arith.constant dense<0.000000e+00> : vector<8xf32>
    %17 = vector.multi_reduction <add>, %16, %cst_6 [1] : vector<8x16xf32> to vector<8xf32>
    %18 = vector.shape_cast %17 : vector<8xf32> to vector<8x1xf32>
    %19 = math.log %14 : vector<8x1xf32>
    %20 = arith.subf %19, %18 : vector<8x1xf32>
    %c1_i32 = arith.constant 1 : i32
    %21 = arith.muli %arg0, %c1_i32 : i32
    %22 = arith.addi %21, %arg1 : i32
    %c8_i32 = arith.constant 8 : i32
    %23 = arith.muli %22, %c8_i32 : i32
    %c8_i32_7 = arith.constant 8 : i32
    %24 = arith.addi %23, %c8_i32_7 : i32
    %c8_i32_8 = arith.constant 8 : i32
    %25 = arith.cmpi sle, %24, %c8_i32_8 : i32
    %26 = arith.extui %25 : i1 to i32
    %c0_i32_9 = arith.constant 0 : i32
    %27 = arith.cmpi ne, %26, %c0_i32_9 : i32
    scf.if %27 {
      %c0_15 = arith.constant 0 : index
      %c0_16 = arith.constant 0 : index
      %35 = vector.load %arg5[%c0_15, %c0_16] : memref<1x1xf32, #tpu.memory_space<vmem>>, vector<1x1xf32>
      %36 = vector.shape_cast %20 : vector<8x1xf32> to vector<1x8x1xf32>
      %cst_17 = arith.constant dense<0.000000e+00> : vector<1xf32>
      %37 = vector.multi_reduction <add>, %36, %cst_17 [1, 2] : vector<1x8x1xf32> to vector<1xf32>
      %38 = vector.shape_cast %37 : vector<1xf32> to vector<1x1x1xf32>
      %39 = vector.extract %38[0, 0, 0] : f32 from vector<1x1x1xf32>
      %40 = vector.broadcast %39 : f32 to vector<1x1xf32>
      %41 = arith.addf %35, %40 : vector<1x1xf32>
      %c0_18 = arith.constant 0 : index
      %c0_19 = arith.constant 0 : index
      %42 = vector.load %arg5[%c0_18, %c0_19] : memref<1x1xf32, #tpu.memory_space<vmem>>, vector<1x1xf32>
      tpu.vector_store %arg5[%c0_18, %c0_19], %41 {strides = array<i32>} : memref<1x1xf32, #tpu.memory_space<vmem>>, vector<1x1xf32>,
    } else {
    }
    %c8_i32_10 = arith.constant 8 : i32
    %28 = arith.addi %23, %c8_i32_10 : i32
    %c8_i32_11 = arith.constant 8 : i32
    %29 = arith.cmpi sgt, %28, %c8_i32_11 : i32
    %30 = arith.extui %29 : i1 to i32
    %c0_i32_12 = arith.constant 0 : i32
    %31 = arith.cmpi ne, %30, %c0_i32_12 : i32
    scf.if %31 {
      %35 = tpu.iota {dimensions = array<i32: 0>} : vector<8x1xi32>
      %36 = vector.broadcast %23 : i32 to vector<8x1xi32>
      %37 = arith.addi %36, %35 : vector<8x1xi32>
      %c8_i32_15 = arith.constant 8 : i32
      %38 = vector.broadcast %c8_i32_15 : i32 to vector<8x1xi32>
      %39 = arith.cmpi slt, %37, %38 : vector<8x1xi32>
      %cst_16 = arith.constant 0.000000e+00 : f32
      %40 = vector.broadcast %cst_16 : f32 to vector<8x1xf32>
      %41 = arith.select %39, %20, %40 : vector<8x1xi1>, vector<8x1xf32>
      %c0_17 = arith.constant 0 : index
      %c0_18 = arith.constant 0 : index
      %42 = vector.load %arg5[%c0_17, %c0_18] : memref<1x1xf32, #tpu.memory_space<vmem>>, vector<1x1xf32>
      %43 = vector.shape_cast %41 : vector<8x1xf32> to vector<1x8x1xf32>
      %cst_19 = arith.constant dense<0.000000e+00> : vector<1xf32>
      %44 = vector.multi_reduction <add>, %43, %cst_19 [1, 2] : vector<1x8x1xf32> to vector<1xf32>
      %45 = vector.shape_cast %44 : vector<1xf32> to vector<1x1x1xf32>
      %46 = vector.extract %45[0, 0, 0] : f32 from vector<1x1x1xf32>
      %47 = vector.broadcast %46 : f32 to vector<1x1xf32>
      %48 = arith.addf %42, %47 : vector<1x1xf32>
      %c0_20 = arith.constant 0 : index
      %c0_21 = arith.constant 0 : index
      %49 = vector.load %arg5[%c0_20, %c0_21] : memref<1x1xf32, #tpu.memory_space<vmem>>, vector<1x1xf32>
      tpu.vector_store %arg5[%c0_20, %c0_21], %48 {strides = array<i32>} : memref<1x1xf32, #tpu.memory_space<vmem>>, vector<1x1xf32>,
    } else {
    }
    %c0_i32_13 = arith.constant 0 : i32
    %32 = arith.cmpi eq, %arg1, %c0_i32_13 : i32
    %33 = arith.extui %32 : i1 to i32
    %c0_i32_14 = arith.constant 0 : i32
    %34 = arith.cmpi ne, %33, %c0_i32_14 : i32
    scf.if %34 {
      %c0_15 = arith.constant 0 : index
      %c0_16 = arith.constant 0 : index
      %35 = vector.load %arg5[%c0_15, %c0_16] : memref<1x1xf32, #tpu.memory_space<vmem>>, vector<1x1xf32>
      %36 = vector.shape_cast %35 : vector<1x1xf32> to vector<1x1x1xf32>
      %c0_17 = arith.constant 0 : index
      %c0_18 = arith.constant 0 : index
      %c0_19 = arith.constant 0 : index
      %37 = vector.load %arg4[%c0_17, %c0_18, %c0_19] : memref<1x1x1xf32, #tpu.memory_space<vmem>>, vector<1x1x1xf32>
      tpu.vector_store %arg4[%c0_17, %c0_18, %c0_19], %36 {strides = array<i32>} : memref<1x1x1xf32, #tpu.memory_space<vmem>>, vector<1x1x1xf32>,
    } else {
    }
    return
  }
  func.func @transform_0(%arg0: i32, %arg1: i32) -> (i32, i32) {
    %c1_i32 = arith.constant 1 : i32
    %0 = arith.muli %arg0, %c1_i32 : i32
    %1 = arith.addi %0, %arg1 : i32
    %c0_i32 = arith.constant 0 : i32
    %2 = arith.minsi %1, %c0_i32 : i32
    %c0_i32_0 = arith.constant 0 : i32
    %c0_i32_1 = arith.constant 0 : i32
    return %2, %c0_i32_0 : i32, i32
  }
  func.func @transform_1(%arg0: i32, %arg1: i32) -> (i32, i32) {
    %c1_i32 = arith.constant 1 : i32
    %0 = arith.muli %arg0, %c1_i32 : i32
    %1 = arith.addi %0, %arg1 : i32
    %c0_i32 = arith.constant 0 : i32
    %2 = arith.minsi %1, %c0_i32 : i32
    %c0_i32_0 = arith.constant 0 : i32
    %c0_i32_1 = arith.constant 0 : i32
    return %2, %c0_i32_0 : i32, i32
  }
  func.func @transform_2(%arg0: i32, %arg1: i32) -> (i32, i32, i32) {
    %c0_i32 = arith.constant 0 : i32
    %c0_i32_0 = arith.constant 0 : i32
    %c0_i32_1 = arith.constant 0 : i32
    return %arg0, %c0_i32, %c0_i32_0 : i32, i32, i32
  }
}

</mosaic_0001>

<bundles_post_ra>
// kernel: tpu_custom_call.1
= control target key start
LH: loop header
LB: loop body
LE: loop exit
PB: predicated region body
PF: predicated region fallthrough
CT: control target
= control target key end

     0   :  { %s455_s9 = smov 0   ;;  %s457_s10 = smov 0   ;;  %s517_s0 = inlined_call_operand.vmem [shape: f32[8,16], index: 0, kind: input, shape index: {}]   ;;  %s518_s1 = inlined_call_operand.vmem [shape: s32[8,1], index: 1, kind: input, shape index: {}]   ;;  %s519_s2 = inlined_call_operand.vmem [shape: f32[2,1,1], index: 2, kind: output, shape index: {}]  }
   0x1   :  { %s459_s11 = smov 0  }
   0x2 LB: > { %s24_s12 = sadd.s32 1, %s432_s10  ;;  %p365_p0 = scmp.ge.s32.totalorder %s436_s11, 1  ;;  %s436_s11 = sphi %s459_s11, %s12_s11   ;;  %s432_s10 = sphi %s457_s10, %s521_s10   ;;  %s428_s9 = sphi %s455_s9, %s520_s9  }
   0x3   : > { %p26_p1 = scmp.ge.s32.totalorder %s24_s12, 2  ;;  %p156_p2 = scmp.lt.s32.totalorder %s436_s11, 3 }
   0x5   : > { %s523_s12 = smov (%p26_p1, %s24_s12), 0  ;;  %p157_p3 = pnand %p365_p0, %p156_p2 }
   0x6   : > { %p186_p4 = scmp.lt.s32.totalorder (!%p157_p3), %s428_s9, 0  ;;  %p205_p5 = scmp.lt.s32.totalorder (!%p157_p3), %s428_s9, 1 }
   0x7   : > { %160 = sbr.rel (%p157_p3) target bundleno = 763 (0x2fb), region = 28  ;;  %s374_s22 = sshll.u32 (!%p157_p3), %s428_s9, 3 }
   0x8   : > { %s241_s26 = sadd.s32 (!%p157_p3), 8, %s374_s22 }
   0x9   : > { %p375_p6 = scmp.gt.s32.totalorder (!%p157_p3), %s241_s26, 8 }
   0xc   : > { %v438_v0 = vmov 0   ;;  %s187_s13 = scalar_select %p186_p4, %s428_s9, 0  ;;  %vm216_vm0 = vcmask 130048   ;;  %v223_v7 = vlaneseq  ;;  %vm212_vm2 = vcmask 0  }
   0xd   : > { %409 = vset.pattern.permute.xlu0 %v438_v0  ;;  %s488_s21 = scalar_select %p205_p5, %s428_s9, 1  ;;  %v439_v14 = vmov 0.0  }
   0xe   : > { %s525_s13 = smov (!%p186_p4, %s187_s13), 0  ;;  %v224_v8 = vand.u32 127, %v223_v7  ;;  %213 = vst.msk [vmem:[#allocation2] sm:$0x1] %vm212_vm2, %v439_v14 }
   0xf   : > { %s369_s14 = sshll.u32 %s525_s13, 3  ;;  %s207_s25 = scalar_lea.vmem %s519_s2, %s488_s21 }
  0x10   : > { %s191_s17 = scalar_lea.vmem %s517_s0, %s369_s14  ;;  %s201_s20 = scalar_lea.vmem %s518_s1, %s369_s14 }
  0x11   : > { %v214_v1 = vld [vmem:[%s191_s17] sm:$0xff] }
  0x12   : > { %v217_v2 = vsel %vm216_vm0, %v214_v1, -inf  ;;  %v215_v3 = vld [vmem:[%s201_s20] sm:$0xff] }
  0x13   : > { %218 = vmax.xlane.f32.xlu0 %v217_v2 }
  0x29   : > { %226 = vperm.xlu0 %409, %v215_v3  }
  0x9c   : > { %v219_v4 = vpop.xlane.xlu0 %218 }
  0x9d   : > { %v220_v5 = vsub.f32 %v214_v1, %v219_v4 }
  0x9f   : > { %v221_v6 = vmul.f32 1.442695, %v220_v5 }
  0xa1   : > { %410 = vpow2.f32 %v221_v6 }
  0xa4   : > { %v227_v9 = vpop.permute.xlu0 %226 }
  0xa5   : > { %vm228_vm1 = vcmp.eq.s32.totalorder %v224_v8, %v227_v9 }
  0xa6   : > { %v232_v12 = vsel %vm228_vm1, %v220_v5, 0.0 }
  0xa7   : > { %v233_v13 = vsel %vm216_vm0, %v232_v12, 0.0 }
  0xae   : > { %v411_v10 = vpop.eup %410 }
  0xaf   : > { %v229_v11 = vsel %vm216_vm0, %v411_v10, 0.0 }
  0xb0   : > { %230 = vadd.xlane.f32.xlu1 %v229_v11 }
  0xb4   : > { %234 = vadd.xlane.f32.xlu1 %v233_v13 }
 0x139   : > { %v231_v15 = vpop.xlane.xlu1 %230 }
 0x13a   : > { %412 = vlog2.f32 %v231_v15 }
 0x13d   : > { %v235_v18 = vpop.xlane.xlu1 %234 }
 0x146   : > { %245 = sbr.rel (%p375_p6) target bundleno = 537 (0x219), region = 36 }
 0x147   : > { %v413_v16 = vpop.eup %412 }
 0x148   : > { %v237_v17 = vmul.f32 0.6931472, %v413_v16 }
 0x14a   : > { %v238_v19 = vsub.f32 %v237_v17, %v235_v18 }
 0x14b   : > { %vm247_vm3 = vcmask 7168   ;;  %v246_v28 = vld [vmem:[#allocation2] sm:$0x1] }
 0x14c   : > { %v248_v20 = vsel %vm247_vm3, %v238_v19, 0.0 }
 0x14d   : > { %249 = vadd.xlane.f32.xlu0 %v248_v20 }
 0x1d6   : > { %v250_v21 = vpop.xlane.xlu0 %249 }
 0x1d7   : > { %v251_v22 = vrot.slane %v250_v21, 4 }
 0x1d9   : > { %v252_v23 = vadd.f32 %v251_v22, %v250_v21 }
 0x1db   : > { %v253_v24 = vrot.slane %v252_v23, 2 }
 0x1dd   : > { %v254_v25 = vadd.f32 %v253_v24, %v252_v23 }
 0x1df   : > { %v255_v26 = vrot.slane %v254_v25, 1 }
 0x1e1   : > { %v256_v27 = vadd.f32 %v255_v26, %v254_v25 }
 0x1e3   : > { %379 = vpush %v256_v27 }
 0x214   : > { %s380_s27 = spop %379 }
 0x215   : > { %v258_v29 = vstv %s380_s27 }
 0x216   : > { %v259_v30 = vadd.f32 %v258_v29, %v246_v28 }
 0x218   : > { %261 = vst.msk [vmem:[#allocation2] sm:$0x1] %vm212_vm2, %v259_v30 }
 0x219 PF: > { %p376_p7 = scmp.le.s32.totalorder %s241_s26, 8 }
 0x21b   : > { %265 = sbr.rel (%p376_p7) target bundleno = 755 (0x2f3), region = 40 }
 0x220   : > { %v267_v31 = vshrl.u32 %v223_v7, 7  ;;  %v268_v32 = vstv %s374_s22  ;;  %vm273_vm4 = vcmask 7168   ;;  %v272_v43 = vld [vmem:[#allocation2] sm:$0x1] }
 0x222   : > { %v269_v33 = vadd.s32 %v268_v32, %v267_v31 }
 0x224   : > { %vm270_vm5 = vcmp.lt.s32.totalorder %v269_v33, 8 }
 0x225   : > { %v271_v34 = vsel %vm270_vm5, %v238_v19, 0.0 }
 0x226   : > { %v274_v35 = vsel %vm273_vm4, %v271_v34, 0.0 }
 0x227   : > { %275 = vadd.xlane.f32.xlu0 %v274_v35 }
 0x2b0   : > { %v276_v36 = vpop.xlane.xlu0 %275 }
 0x2b1   : > { %v277_v37 = vrot.slane %v276_v36, 4 }
 0x2b3   : > { %v278_v38 = vadd.f32 %v277_v37, %v276_v36 }
 0x2b5   : > { %v279_v39 = vrot.slane %v278_v38, 2 }
 0x2b7   : > { %v280_v40 = vadd.f32 %v279_v39, %v278_v38 }
 0x2b9   : > { %v281_v41 = vrot.slane %v280_v40, 1 }
 0x2bb   : > { %v282_v42 = vadd.f32 %v281_v41, %v280_v40 }
 0x2bd   : > { %381 = vpush %v282_v42 }
 0x2ee   : > { %s382_s28 = spop %381 }
 0x2ef   : > { %v284_v44 = vstv %s382_s28 }
 0x2f0   : > { %v285_v45 = vadd.f32 %v284_v44, %v272_v43 }
 0x2f2   : > { %287 = vst.msk [vmem:[#allocation2] sm:$0x1] %vm212_vm2, %v285_v45 }
 0x2f3 PF:  {}
 0x2f9   : > { %v291_v46 = vld [vmem:[#allocation2] sm:$0x1] }
 0x2fa   : > { %293 = vst.msk [vmem:[%s207_s25] sm:$0x1] %vm212_vm2, %v291_v46 }
 0x2fb PF: > { %s12_s11 = sadd.s32 1, %s436_s11   ;;  %s520_s9 = smov %s432_s10 }
 0x2fc   : > { %p9_p8 = scmp.ge.s32.totalorder %s12_s11, 4   ;;  %s521_s10 = smov %s523_s12 }
 0x2fe   :  { %11 = sbr.rel (!%p9_p8) target bundleno = 2 (0x2), region = 77 }

</bundles_post_ra>
